<compile_context>
chip_gen: v7x
topology: tpu7x:2x2x1
jax: 0.10.0
libtpu: 0.0.40
codegen_flags: <defaults>
</compile_context>

<pallas_src>
import functools

import jax
import jax.numpy as jnp
from jax.experimental import pallas as pl
from jax.experimental.pallas import tpu as pltpu


def _round_up(n, m):
    return (n + m - 1) // m * m


def _mlp_kernel(x_ref, wg_ref, wu_ref, wd_ref, o_ref, acc_ref):
    """One (row-tile, intermediate-tile) step of the fused Llama MLP.

    x_ref:   (tm, H)  bf16 activation tile (same block across the I axis)
    wg_ref:  (H, ti)  bf16 gate-projection column tile
    wu_ref:  (H, ti)  bf16 up-projection column tile
    wd_ref:  (ti, H)  bf16 down-projection row tile
    o_ref:   (tm, H)  output tile (written on the last I step)
    acc_ref: (tm, H)  f32 accumulator scratch
    """
    j = pl.program_id(1)

    @pl.when(j == 0)
    def _():
        acc_ref[...] = jnp.zeros_like(acc_ref)

    x = x_ref[...]                                              # bf16
    g = jnp.dot(x, wg_ref[...], preferred_element_type=jnp.float32)
    u = jnp.dot(x, wu_ref[...], preferred_element_type=jnp.float32)
    # SiLU (Llama hidden_act="silu") is elementwise over I, so applying it per
    # I-tile before the partial down-projection is exact.
    h = (g * jax.nn.sigmoid(g)) * u
    acc_ref[...] += jnp.dot(h.astype(wd_ref.dtype), wd_ref[...],
                            preferred_element_type=jnp.float32)

    @pl.when(j == pl.num_programs(1) - 1)
    def _():
        o_ref[...] = acc_ref[...].astype(o_ref.dtype)


def prepare_weights(w_gate, w_up, w_down, *, ti=256, dtype=jnp.bfloat16):
    """One-time weight prep (kept OUT of the per-call hot path).

    PyTorch [out, in] -> [in, out], cast ternary values to bf16 (exact), and
    zero-pad the intermediate dim I to a multiple of ti (zero gate/up columns
    give h == 0, and the matching zero down rows contribute nothing).
    """
    I, H = w_gate.shape
    Ip = _round_up(I, ti)
    wg_t = jnp.pad(w_gate.T.astype(dtype), ((0, 0), (0, Ip - I)))   # (H, Ip)
    wu_t = jnp.pad(w_up.T.astype(dtype), ((0, 0), (0, Ip - I)))     # (H, Ip)
    wd_t = jnp.pad(w_down.T.astype(dtype), ((0, Ip - I), (0, 0)))   # (Ip, H)
    return wg_t, wu_t, wd_t


@functools.partial(jax.jit, static_argnames=("tm", "ti"))
def llama_ternary_mlp(x, wg_t, wu_t, wd_t, *, tm=256, ti=256):
    """x: [B, S, H]; wg_t/wu_t: [H, Ip]; wd_t: [Ip, H] (from prepare_weights)."""
    B, S, H = x.shape
    Ip = wg_t.shape[1]
    assert Ip % ti == 0, "prepare_weights must be called with the same ti"

    M = B * S
    tm = min(tm, _round_up(M, 16))     # bf16 sublane packing: multiple of 16
    Mp = _round_up(M, tm)

    x2d = x.reshape(M, H).astype(wg_t.dtype)
    if Mp != M:
        x2d = jnp.pad(x2d, ((0, Mp - M), (0, 0)))   # padded rows sliced off below

    cost = pl.CostEstimate(
        flops=6 * Mp * H * Ip,                       # 3 matmuls, 2*M*H*I each
        transcendentals=Mp * Ip,                     # sigmoid
        bytes_accessed=(x2d.size + wg_t.size + wu_t.size + wd_t.size) * 2
        + Mp * H * x.dtype.itemsize,
    )

    out2d = pl.pallas_call(
        _mlp_kernel,
        out_shape=jax.ShapeDtypeStruct((Mp, H), x.dtype),
        grid_spec=pltpu.PrefetchScalarGridSpec(
            num_scalar_prefetch=0,
            grid=(Mp // tm, Ip // ti),               # reduction (I) axis last
            in_specs=[
                pl.BlockSpec((tm, H), lambda i, j: (i, 0)),    # x row tile
                pl.BlockSpec((H, ti), lambda i, j: (0, j)),    # gate cols stream
                pl.BlockSpec((H, ti), lambda i, j: (0, j)),    # up cols stream
                pl.BlockSpec((ti, H), lambda i, j: (j, 0)),    # down rows stream
            ],
            out_specs=pl.BlockSpec((tm, H), lambda i, j: (i, 0)),
            scratch_shapes=[pltpu.VMEM((tm, H), jnp.float32)],
        ),
        compiler_params=pltpu.CompilerParams(
            dimension_semantics=("parallel", "arbitrary"),
            vmem_limit_bytes=64 * 1024 * 1024),
        cost_estimate=cost,
    )(x2d, wg_t, wu_t, wd_t)

    return out2d[:M].reshape(B, S, H)


def make_ternary_weight(key, out_features, in_features, sparsity=0.5,
                        dtype=jnp.float32):
    """Deterministic ternary weight in {-1, 0, +1} with ~`sparsity` zeros."""
    k_mask, k_sign = jax.random.split(key)
    keep = jax.random.uniform(k_mask, (out_features, in_features)) >= sparsity
    sign = jnp.where(
        jax.random.uniform(k_sign, (out_features, in_features)) < 0.5, -1.0, 1.0)
    return keep.astype(dtype) * sign.astype(dtype)
    # TODO(synk): TernaryLinear's optional uniform-block sparsity / padding
    # bookkeeping is a training-time weight-structuring detail; the forward
    # math equals a dense matmul against the ternary weight values.


def reference_mlp(x, wg_t, wu_t, wd_t):
    """Pure-JAX reference mirroring the kernel's bf16-operand / f32-accum math."""
    B, S, H = x.shape
    xb = x.reshape(B * S, H).astype(jnp.bfloat16)
    g = jnp.dot(xb, wg_t, preferred_element_type=jnp.float32)
    u = jnp.dot(xb, wu_t, preferred_element_type=jnp.float32)
    h = (jax.nn.silu(g) * u).astype(jnp.bfloat16)
    o = jnp.dot(h, wd_t, preferred_element_type=jnp.float32)
    return o.reshape(B, S, H).astype(x.dtype)


if __name__ == "__main__":
    # Small, TPU-friendly shapes consistent with the module's config fields.
    batch, seq = 2, 8
    hidden_size = 256
    intermediate_size = 512
    sparsity = 0.5
    ti = 256   # 2 grid steps along I -> exercises the accumulator path

    key = jax.random.PRNGKey(0)
    kx, kg, ku, kd = jax.random.split(key, 4)

    x = jax.random.normal(kx, (batch, seq, hidden_size), dtype=jnp.float32)
    w_gate = make_ternary_weight(kg, intermediate_size, hidden_size, sparsity)
    w_up = make_ternary_weight(ku, intermediate_size, hidden_size, sparsity)
    w_down = make_ternary_weight(kd, hidden_size, intermediate_size, sparsity)

    # Weight layout conversion / bf16 cast / I padding happens once, off the
    # hot path (per the PyTorch module these are fixed parameters).
    wg_t, wu_t, wd_t = prepare_weights(w_gate, w_up, w_down, ti=ti)

    out = llama_ternary_mlp(x, wg_t, wu_t, wd_t, tm=256, ti=ti)
    jax.block_until_ready(out)

    ref = reference_mlp(x, wg_t, wu_t, wd_t)
    assert out.shape == (batch, seq, hidden_size)
    assert jnp.allclose(out, ref, atol=0.5, rtol=1e-2), (
        "mismatch vs bf16 reference: max abs diff "
        f"{float(jnp.max(jnp.abs(out - ref)))}")

    print("KERNEL_OK")
</pallas_src>

<mosaic_0001>
module attributes {stable_mosaic.version = 11 : i64} {
  func.func @_mlp_kernel(%arg0: i32, %arg1: i32, %arg2: memref<16x256xbf16, #tpu.memory_space<vmem>>, %arg3: memref<256x256xbf16, #tpu.memory_space<vmem>>, %arg4: memref<256x256xbf16, #tpu.memory_space<vmem>>, %arg5: memref<256x256xbf16, #tpu.memory_space<vmem>>, %arg6: memref<16x256xf32, #tpu.memory_space<vmem>>, %arg7: memref<16x256xf32, #tpu.memory_space<vmem>>) attributes {dimension_semantics = [#tpu.dimension_semantics<parallel>, #tpu.dimension_semantics<arbitrary>], iteration_bounds = array<i64: 1, 2>, scalar_prefetch = 0 : i64, scratch_operands = 1 : i64, tpu.core_type = #tpu.core_type<tc>, window_params = [{transform_indices = @transform_0, window_bounds = array<i64: 16, 256>}, {transform_indices = @transform_1, window_bounds = array<i64: 256, 256>}, {transform_indices = @transform_2, window_bounds = array<i64: 256, 256>}, {transform_indices = @transform_3, window_bounds = array<i64: 256, 256>}, {transform_indices = @transform_4, window_bounds = array<i64: 16, 256>}]} {
    %c0_i32 = arith.constant 0 : i32
    %0 = arith.cmpi eq, %arg1, %c0_i32 : i32
    %1 = arith.extui %0 : i1 to i32
    %c0_i32_0 = arith.constant 0 : i32
    %2 = arith.cmpi ne, %1, %c0_i32_0 : i32
    scf.if %2 {
      %cst_16 = arith.constant 0.000000e+00 : f32
      %24 = vector.broadcast %cst_16 : f32 to vector<16x256xf32>
      %c0_17 = arith.constant 0 : index
      %c0_18 = arith.constant 0 : index
      %25 = vector.load %arg7[%c0_17, %c0_18] : memref<16x256xf32, #tpu.memory_space<vmem>>, vector<16x256xf32>
      tpu.vector_store %arg7[%c0_17, %c0_18], %24 {strides = array<i32>} : memref<16x256xf32, #tpu.memory_space<vmem>>, vector<16x256xf32>,
    } else {
    }
    %c0 = arith.constant 0 : index
    %c0_1 = arith.constant 0 : index
    %3 = vector.load %arg2[%c0, %c0_1] : memref<16x256xbf16, #tpu.memory_space<vmem>>, vector<16x256xbf16>
    %c0_2 = arith.constant 0 : index
    %c0_3 = arith.constant 0 : index
    %4 = vector.load %arg3[%c0_2, %c0_3] : memref<256x256xbf16, #tpu.memory_space<vmem>>, vector<256x256xbf16>
    %cst = arith.constant dense<0.000000e+00> : vector<16x256xf32>
    %5 = tpu.matmul %3, %4, %cst {dimension_numbers = #tpu.dot_dimension_numbers<[1], [0], [0], [1], [0, 0, 1, 1], [], []>} : vector<16x256xbf16>, vector<256x256xbf16>, vector<16x256xf32> -> vector<16x256xf32>
    %c0_4 = arith.constant 0 : index
    %c0_5 = arith.constant 0 : index
    %6 = vector.load %arg4[%c0_4, %c0_5] : memref<256x256xbf16, #tpu.memory_space<vmem>>, vector<256x256xbf16>
    %cst_6 = arith.constant dense<0.000000e+00> : vector<16x256xf32>
    %7 = tpu.matmul %3, %6, %cst_6 {dimension_numbers = #tpu.dot_dimension_numbers<[1], [0], [0], [1], [0, 0, 1, 1], [], []>} : vector<16x256xbf16>, vector<256x256xbf16>, vector<16x256xf32> -> vector<16x256xf32>
    %8 = arith.negf %5 : vector<16x256xf32>
    %9 = math.exp %8 : vector<16x256xf32>
    %cst_7 = arith.constant 1.000000e+00 : f32
    %10 = vector.broadcast %cst_7 : f32 to vector<16x256xf32>
    %11 = arith.addf %10, %9 : vector<16x256xf32>
    %12 = arith.divf %10, %11 : vector<16x256xf32>
    %13 = arith.mulf %5, %12 : vector<16x256xf32>
    %14 = arith.mulf %13, %7 : vector<16x256xf32>
    %c0_8 = arith.constant 0 : index
    %c0_9 = arith.constant 0 : index
    %15 = vector.load %arg7[%c0_8, %c0_9] : memref<16x256xf32, #tpu.memory_space<vmem>>, vector<16x256xf32>
    %16 = arith.truncf %14 : vector<16x256xf32> to vector<16x256xbf16>
    %c0_10 = arith.constant 0 : index
    %c0_11 = arith.constant 0 : index
    %17 = vector.load %arg5[%c0_10, %c0_11] : memref<256x256xbf16, #tpu.memory_space<vmem>>, vector<256x256xbf16>
    %cst_12 = arith.constant dense<0.000000e+00> : vector<16x256xf32>
    %18 = tpu.matmul %16, %17, %cst_12 {dimension_numbers = #tpu.dot_dimension_numbers<[1], [0], [0], [1], [0, 0, 1, 1], [], []>} : vector<16x256xbf16>, vector<256x256xbf16>, vector<16x256xf32> -> vector<16x256xf32>
    %19 = arith.addf %15, %18 : vector<16x256xf32>
    %c0_13 = arith.constant 0 : index
    %c0_14 = arith.constant 0 : index
    %20 = vector.load %arg7[%c0_13, %c0_14] : memref<16x256xf32, #tpu.memory_space<vmem>>, vector<16x256xf32>
    tpu.vector_store %arg7[%c0_13, %c0_14], %19 {strides = array<i32>} : memref<16x256xf32, #tpu.memory_space<vmem>>, vector<16x256xf32>,
    %c1_i32 = arith.constant 1 : i32
    %21 = arith.cmpi eq, %arg1, %c1_i32 : i32
    %22 = arith.extui %21 : i1 to i32
    %c0_i32_15 = arith.constant 0 : i32
    %23 = arith.cmpi ne, %22, %c0_i32_15 : i32
    scf.if %23 {
      %c0_16 = arith.constant 0 : index
      %c0_17 = arith.constant 0 : index
      %24 = vector.load %arg7[%c0_16, %c0_17] : memref<16x256xf32, #tpu.memory_space<vmem>>, vector<16x256xf32>
      %c0_18 = arith.constant 0 : index
      %c0_19 = arith.constant 0 : index
      %25 = vector.load %arg6[%c0_18, %c0_19] : memref<16x256xf32, #tpu.memory_space<vmem>>, vector<16x256xf32>
      tpu.vector_store %arg6[%c0_18, %c0_19], %24 {strides = array<i32>} : memref<16x256xf32, #tpu.memory_space<vmem>>, vector<16x256xf32>,
    } else {
    }
    return
  }
  func.func @transform_0(%arg0: i32, %arg1: i32) -> (i32, i32) {
    %c0_i32 = arith.constant 0 : i32
    %c0_i32_0 = arith.constant 0 : i32
    return %arg0, %c0_i32 : i32, i32
  }
  func.func @transform_1(%arg0: i32, %arg1: i32) -> (i32, i32) {
    %c0_i32 = arith.constant 0 : i32
    %c0_i32_0 = arith.constant 0 : i32
    return %c0_i32, %arg1 : i32, i32
  }
  func.func @transform_2(%arg0: i32, %arg1: i32) -> (i32, i32) {
    %c0_i32 = arith.constant 0 : i32
    %c0_i32_0 = arith.constant 0 : i32
    return %c0_i32, %arg1 : i32, i32
  }
  func.func @transform_3(%arg0: i32, %arg1: i32) -> (i32, i32) {
    %c0_i32 = arith.constant 0 : i32
    %c0_i32_0 = arith.constant 0 : i32
    return %arg1, %c0_i32 : i32, i32
  }
  func.func @transform_4(%arg0: i32, %arg1: i32) -> (i32, i32) {
    %c0_i32 = arith.constant 0 : i32
    %c0_i32_0 = arith.constant 0 : i32
    return %arg0, %c0_i32 : i32, i32
  }
}

</mosaic_0001>

<bundles_post_ra>
// kernel: llama_ternary_mlp.1
= control target key start
LH: loop header
LB: loop body
LE: loop exit
PB: predicated region body
PF: predicated region fallthrough
CT: control target
= control target key end

     0   :  { %s2254_s0 = inlined_call_operand.hbm [shape: bf16[16,256], index: 0, kind: input, shape index: {}]   ;;  %s2255_s1 = inlined_call_operand.hbm [shape: bf16[256,512], index: 1, kind: input, shape index: {}]   ;;  %s2256_s2 = inlined_call_operand.hbm [shape: bf16[256,512], index: 2, kind: input, shape index: {}]   ;;  %s2257_s3 = inlined_call_operand.hbm [shape: bf16[512,256], index: 3, kind: input, shape index: {}]   ;;  %s2258_s4 = inlined_call_operand.hbm [shape: f32[16,256], index: 4, kind: output, shape index: {}]  }
   0x1   :  { %2270 = sst [smem:[#allocation16_spill]] %s2255_s1 }
   0x2   :  { %2271 = sst [smem:[#allocation17_spill]] %s2256_s2 }
   0x3   :  { %9 = vsyncpa [#allocation4], 0 }
   0x4   :  { %10 = vsyncpa [#allocation7], 0 }
   0x5   :  { %12 = vsyncpa [#allocation7 + $0x1], 0 }
   0x6   :  { %13 = vsyncpa [#allocation10], 0 }
   0x7   :  { %15 = vsyncpa [#allocation10 + $0x1], 0 }
   0x8   :  { %16 = vsyncpa [#allocation5], 0  ;;  %s1869_s15 = smov 0   ;;  %s1871_s16 = smov 0  }
   0x9   :  { %s1873_s17 = smov 0   ;;  %s1875_s18 = smov 0  }
   0xa   :  { %s1877_s19 = smov 0   ;;  %s1879_s20 = smov 0  }
   0xb LB: > { %s31_s21 = sadd.s32 1, %s1827_s19  ;;  %s67_s22 = sadd.s32 1, %s1819_s17  ;;  %s1831_s20 = sphi %s1879_s20, %s22_s20   ;;  %s1827_s19 = sphi %s1877_s19, %s2294_s19   ;;  %s1823_s18 = sphi %s1875_s18, %s2293_s18   ;;  %s1819_s17 = sphi %s1873_s17, %s2292_s17   ;;  %s1815_s16 = sphi %s1871_s16, %s2291_s16   ;;  %s1811_s15 = sphi %s1869_s15, %s2290_s15  }
   0xc   : > { %p32_p0 = scmp.ge.s32.totalorder %s31_s21, 2  ;;  %p74_p1 = scmp.ne.s32.totalorder %s1819_s17, %s1815_s16 }
   0xd   : > { %p75_p2 = scmp.eq.s32.totalorder %s1831_s20, 0  ;;  %p1402_p5 = scmp.lt.s32.totalorder %s1831_s20, 2 }
   0xe   : > { %s2296_s21 = smov (%p32_p0, %s31_s21), 0  ;;  %s199_s25 = sand.u32 1, %s1831_s20  }
   0xf   : > { %p1906_p3 = por %p75_p2, %p74_p1  ;;  %s64_s24 = ssub.s32 %s1827_s19, %s2296_s21 }
  0x10   : > { %p65_p4 = scmp.eq.s32.totalorder %s64_s24, 0  ;;  %s2259_s26 = sand.u32 1, %s1819_s17  }
  0x11   : > { %s1920_s28 = sshll.u32 %s2259_s26, 8  ;;  %s1369_s29 = sshll.u32 %s1827_s19, 7 }
  0x12   : > { %s1916_s27 = scalar_select %p65_p4, %s1819_s17, %s67_s22  }
  0x13   : > { %s2273_s1 = sld [smem:[#allocation16_spill]]  ;;  %s203_s7 = scalar_lea.vmem [#allocation6], %s1920_s28 }
  0x14   : > { %s210_s8 = sshll.u32 %s203_s7, 4  ;;  %p1933_p6 = pnand %p1402_p5, %p1906_p3  ;;  %s1929_s8 = int_to_ptr.vmem [resolvable:$true] %s210_s8 }
  0x15   : > { %s2275_s2 = sld [smem:[#allocation17_spill]]  ;;  %s1942_s13 = scalar_lea.sflag [#allocation7], %s199_s25 }
  0x16   : > { %s2274_s9 = scalar_select %p1933_p6, 1, 0 }
  0x17   : > { %p1948_p8 = pneg %p1933_p6 }
  0x19   : > { %s1926_s6 = scalar_lea.hbm %s2273_s1, %s1369_s29  ;;  %s1630_s30 = scalar_lea.hbm %s2273_s1, 8192 }
  0x1a   : > { %s1625_s14 = scalar_lea.hbm %s1926_s6, 4096  ;;  %p1631_p11 = scmp.lt.u32.totalorder %s1926_s6, %s2273_s1 }
  0x1b   : > { %s1940_s12 = scalar_lea.hbm %s2275_s2, %s1369_s29  ;;  %p1626_p7 = scmp.ne.s32.totalorder %s1926_s6, %s1625_s14 }
  0x1c   : > { %s2276_s22 = scalar_select %p1948_p8, 1, 0 }
  0x1d   : > { %p1628_p9 = pnand %p1948_p8, %p1626_p7  ;;  %p1632_p12 = scmp.lt.u32.totalorder %s1630_s30, %s1625_s14 }
  0x1e   : > { %p1634_p0 = scmp.lt.u32.totalorder %s1625_s14, %s1926_s6 }
  0x1f   : > { %p1629_p10 = pneg %p1628_p9  ;;  %p1633_p13 = por %p1632_p12, %p1631_p11 }
  0x21   : > { %p1635_p1 = por %p1634_p0, %p1633_p13 }
  0x23   : > { %p1636_p2 = pnand %p1635_p1, %p1629_p10 }
  0x25   : > { %1639 = shalt.err (!%p1636_p2)
}
  0x26   : > { %s1640_s25 = scalar_lea.vmem %s1929_s8, 4096  ;;  %s1833_s7 = smov [#allocation6]  }
  0x27   : > { %p1641_p3 = scmp.ne.s32.totalorder %s1929_s8, %s1640_s25  ;;  %s1645_s10 = sshll.u32 %s1833_s7, 4  ;;  %s1646_s10 = int_to_ptr.vmem [resolvable:$false] %s1645_s10 }
  0x28   : > { %s1647_s11 = scalar_lea.vmem %s1646_s10, 8192  ;;  %p1648_p7 = scmp.lt.s32.totalorder %s1929_s8, %s1646_s10 }
  0x29   : > { %p1643_p4 = pnand %p1641_p3, %p1948_p8  ;;  %p1649_p9 = scmp.lt.s32.totalorder %s1647_s11, %s1640_s25 }
  0x2b   : > { %p1644_p5 = pneg %p1643_p4  ;;  %p1650_p11 = por %p1649_p9, %p1648_p7 }
  0x2d   : > { %p1651_p12 = pnand %p1650_p11, %p1644_p5 }
  0x2f   : > { %1654 = shalt.err (!%p1651_p12)
}
  0x30   : > { %s2260_s14 = smov 256   ;;  %s2261_s23 = smov 128  }
  0x31   : > { %s1836_s24 = smov 8   ;;  %s1976_s30 = sadd.s32 4294967295, %s1831_s20  }
  0x32   : > { %1394 = dma.hbm_to_vmem [thread:$0]  (!%p1933_p6), %s1926_s6, 4096, %s1929_s8, %s1942_s13, %s2260_s14, %s2261_s23, %s1836_s24  }
  0x33   : > { %p80_p10 = scmp.ne.s32.totalorder %s1815_s16, %s1811_s15  ;;  %p2263_p13 = scmp.eq.s32.totalorder %s1976_s30, 0 }
  0x34   : > { %p1243_p0 = scmp.ge.s32.totalorder %s1831_s20, 1  ;;  %p169_p1 = scmp.lt.s32.totalorder %s1831_s20, 3 }
  0x35   : > { %p1985_p2 = por %p2263_p13, %p80_p10  ;;  %s1837_s8 = smov [#allocation3]  }
  0x36   : > { %p1989_p3 = pnand %p1243_p0, %p169_p1  ;;  %s185_s29 = sshll.u32 %s1837_s8, 4  ;;  %s1995_s29 = int_to_ptr.vmem [resolvable:$true] %s185_s29 }
  0x37   : > { %s2277_s5 = scalar_select %p1985_p2, 1, 0 }
  0x38   : > { %s2278_s6 = scalar_select %p1989_p3, 1, 0 }
  0x39   : > { %p1387_p4 = pneg %p1989_p3  ;;  %s224_s15 = scalar_lea.vmem [#allocation8], %s1920_s28 }
  0x3a   : > { %s231_s25 = sshll.u32 %s224_s15, 4  ;;  %s1655_s10 = scalar_lea.hbm %s1940_s12, 4096  ;;  %s2004_s25 = int_to_ptr.vmem [resolvable:$true] %s231_s25 }
  0x3b   : > { %p2000_p5 = pnand %p1387_p4, %p2263_p13  ;;  %p1656_p7 = scmp.ne.s32.totalorder %s1940_s12, %s1655_s10 }
  0x3c   : > { %s1660_s26 = scalar_lea.hbm %s2275_s2, 8192  ;;  %p1661_p12 = scmp.lt.u32.totalorder %s1940_s12, %s2275_s2 }
  0x3d   : > { %s2279_s7 = scalar_select %p2000_p5, 1, 0 }
  0x3e   : > { %p1658_p9 = pnand %p1656_p7, %p1948_p8  ;;  %p1662_p10 = scmp.lt.u32.totalorder %s1660_s26, %s1655_s10 }
  0x3f   : > { %p1664_p1 = scmp.lt.u32.totalorder %s1655_s10, %s1940_s12 }
  0x40   : > { %p1659_p11 = pneg %p1658_p9  ;;  %p1663_p0 = por %p1662_p10, %p1661_p12 }
  0x42   : > { %p1665_p4 = por %p1664_p1, %p1663_p0 }
  0x44   : > { %p1666_p13 = pnand %p1665_p4, %p1659_p11 }
  0x46   : > { %1669 = shalt.err (!%p1666_p13)
}
  0x47   : > { %s1670_s15 = scalar_lea.vmem %s2004_s25, 4096  ;;  %s1838_s11 = smov [#allocation8]  }
  0x48   : > { %p1671_p7 = scmp.ne.s32.totalorder %s2004_s25, %s1670_s15  ;;  %s1675_s8 = sshll.u32 %s1838_s11, 4  ;;  %s1676_s8 = int_to_ptr.vmem [resolvable:$false] %s1675_s8 }
  0x49   : > { %s1677_s14 = scalar_lea.vmem %s1676_s8, 8192  ;;  %p1678_p3 = scmp.lt.s32.totalorder %s2004_s25, %s1676_s8 }
  0x4a   : > { %p1673_p9 = pnand %p1671_p7, %p1948_p8  ;;  %p1679_p5 = scmp.lt.s32.totalorder %s1677_s14, %s1670_s15 }
  0x4c   : > { %p1674_p2 = pneg %p1673_p9  ;;  %p1680_p12 = por %p1679_p5, %p1678_p3 }
  0x4e   : > { %p1681_p10 = pnand %p1680_p12, %p1674_p2 }
  0x50   : > { %1684 = shalt.err (!%p1681_p10)
}
  0x51   : > { %s2280_s26 = smov 128   ;;  %s2281_s23 = smov 256  }
  0x52   : > { %1397 = dma.hbm_to_vmem [thread:$0]  (!%p1933_p6), %s1940_s12, 4096, %s2004_s25, %s1942_s13, %s2281_s23, %s2280_s26, %s1836_s24  }
  0x53   : > { %s1685_s11 = scalar_lea.hbm %s2254_s0, 256  ;;  %p2282_p2 = scmp.ne.s32.totalorder %s2279_s7, 0 }
  0x54   : > { %p1686_p13 = scmp.ne.s32.totalorder %s2254_s0, %s1685_s11  ;;  %p1692_p0 = scmp.lt.u32.totalorder %s1685_s11, %s2254_s0 }
  0x55   : > { %p1687_p3 = pneg %p2282_p2 }
  0x57   : > { %p1688_p5 = pnand %p1687_p3, %p1686_p13 }
  0x59   : > { %p1689_p11 = pneg %p1688_p5 }
  0x5b   : > { %p1694_p1 = pnand %p1692_p0, %p1689_p11 }
  0x5d   : > { %1697 = shalt.err (!%p1694_p1)
}
  0x5e   : > { %s1698_s12 = scalar_lea.vmem %s1995_s29, 256  ;;  %p1706_p12 = scmp.lt.s32.totalorder %s1995_s29, %s1995_s29 }
  0x5f   : > { %p1699_p4 = scmp.ne.s32.totalorder %s1995_s29, %s1698_s12  ;;  %p1707_p10 = scmp.lt.s32.totalorder %s1698_s12, %s1698_s12 }
  0x61   : > { %p1701_p7 = pnand %p1699_p4, %p1687_p3  ;;  %p1708_p6 = por %p1707_p10, %p1706_p12 }
  0x63   : > { %p1702_p9 = pneg %p1701_p7 }
  0x65   : > { %p1709_p8 = pnand %p1708_p6, %p1702_p9 }
  0x67   : > { %1712 = shalt.err (!%p1709_p8)
}
  0x68   : > { %1390 = dma.hbm_to_vmem [thread:$0]  (!%p2282_p2), %s2254_s0, 256, %s1995_s29, [#allocation4], %s2280_s26, %s2280_s26, %s1836_s24  }
  0x69   : > { %s1372_s13 = sshll.u32 %s1827_s19, 12  ;;  %s245_s25 = scalar_lea.vmem [#allocation9], %s1920_s28 }
  0x6a   : > { %s253_s23 = sshll.u32 %s245_s25, 4  ;;  %s2060_s8 = scalar_lea.hbm %s2257_s3, %s1372_s13  ;;  %s2062_s23 = int_to_ptr.vmem [resolvable:$true] %s253_s23 }
  0x6b   : > { %s2283_s7 = sand.u32 1, %s1819_s17   ;;  %s1713_s14 = scalar_lea.hbm %s2060_s8, 4096 }
  0x6c   : > { %s2066_s15 = scalar_lea.sflag [#allocation10], %s2283_s7  ;;  %p1714_p6 = scmp.ne.s32.totalorder %s2060_s8, %s1713_s14 }
  0x6d   : > { %p2284_p8 = scmp.ne.s32.totalorder %s2276_s22, 0  ;;  %s1718_s12 = scalar_lea.hbm %s2257_s3, 8192 }
  0x6e   : > { %p1719_p3 = scmp.lt.u32.totalorder %s2060_s8, %s2257_s3  ;;  %p1720_p5 = scmp.lt.u32.totalorder %s1718_s12, %s1713_s14 }
  0x6f   : > { %p1716_p13 = pnand %p1714_p6, %p2284_p8  ;;  %p1722_p0 = scmp.lt.u32.totalorder %s1713_s14, %s2060_s8 }
  0x70   : > { %p1721_p11 = por %p1720_p5, %p1719_p3 }
  0x71   : > { %p1717_p2 = pneg %p1716_p13 }
  0x72   : > { %p1723_p1 = por %p1722_p0, %p1721_p11 }
  0x74   : > { %p1724_p4 = pnand %p1723_p1, %p1717_p2 }
  0x76   : > { %1727 = shalt.err (!%p1724_p4)
}
  0x77   : > { %s1728_s13 = scalar_lea.vmem %s2062_s23, 4096  ;;  %s1839_s25 = smov [#allocation9]  }
  0x78   : > { %p1729_p7 = scmp.ne.s32.totalorder %s2062_s23, %s1728_s13  ;;  %s1733_s10 = sshll.u32 %s1839_s25, 4  ;;  %s1734_s10 = int_to_ptr.vmem [resolvable:$false] %s1733_s10 }
  0x79   : > { %s1735_s11 = scalar_lea.vmem %s1734_s10, 8192  ;;  %p1736_p10 = scmp.lt.s32.totalorder %s2062_s23, %s1734_s10 }
  0x7a   : > { %p1731_p9 = pnand %p1729_p7, %p2284_p8  ;;  %p1737_p6 = scmp.lt.s32.totalorder %s1735_s11, %s1728_s13 }
  0x7c   : > { %p1732_p12 = pneg %p1731_p9  ;;  %p1738_p13 = por %p1737_p6, %p1736_p10 }
  0x7e   : > { %p1739_p3 = pnand %p1738_p13, %p1732_p12 }
  0x80   : > { %1742 = shalt.err (!%p1739_p3)
}
  0x81   : > { %p2285_p2 = scmp.ne.s32.totalorder %s2274_s9, 0  ;;  %p2286_p8 = scmp.ne.s32.totalorder %s2278_s6, 0 }
  0x82   : > { %p2287_p5 = scmp.eq.s32.totalorder (!%p2286_p8), %s1976_s30, 0 }
  0x83   : > { %1400 = dma.hbm_to_vmem [thread:$0]  (!%p2285_p2), %s2060_s8, 4096, %s2062_s23, %s2066_s15, %s2280_s26, %s2280_s26, %s1836_s24  }
  0x84   : > { %265 = sbr.rel (%p2286_p8) target bundleno = 722 (0x2d2), region = 36 }
  0x8b   : > { %1794 = dma.done.wait (%p2287_p5), [#allocation4], 256   ;;  %p2288_p11 = pmov %p2287_p5 }
  0x8c   : > { %s271_s9 = sand.u32 1, %s1976_s30   ;;  %s273_s22 = sand.u32 1, %s1815_s16  }
  0x8d   : > { %1796 = vsyncadd (%p2288_p11), [#allocation4], 4294967040  ;;  %s1258_s7 = sshll.u32 %s273_s22, 8  ;;  %s272_s14 = scalar_lea.sflag [#allocation7], %s271_s9 }
  0x8e   : > { %s2101_s28 = scalar_lea.vmem [#allocation6], %s1258_s7  ;;  %p2289_p0 = scmp.ne.s32.totalorder %s2277_s5, 0 }
  0x90   : > { %1798 = dma.done.wait (%p2289_p0), %s272_s14, 8192  }
  0x91   : > { %1800 = vsyncadd (%p2289_p0), %s272_s14, 4294959104  ;;  %s2107_s24 = scalar_lea.vmem [#allocation8], %s1258_s7  ;;  %s290_s6 = scalar_lea.sflag [#allocation10], %s273_s22 }
  0x92   : > { %s2109_s26 = scalar_lea.vmem [#allocation9], %s1258_s7 }
  0x93   : > { %1802 = dma.done.wait (%p2289_p0), %s290_s6, 4096  }
  0x94   : > { %1804 = vsyncadd (%p2289_p0), %s290_s6, 4294963200  ;;  %p1261_p1 = scmp.ne.s32.totalorder %s1823_s18, 0 }
  0x95   : > { %v1840_v0 = vmov (!%p1261_p1), 0.0  }
  0x96   : > { %331 = sbr.rel (%p1261_p1) target bundleno = 157 (0x9d), region = 56  ;;  %332 = vst [vmem:[#allocation2] sm:$0xff] (!%p1261_p1), %v1840_v0  ;;  %333 = vst [vmem:[#allocation2 + $0x8] sm:$0xff] (!%p1261_p1), %v1840_v0 }
  0x97   : > { %334 = vst [vmem:[#allocation2 + $0x10] sm:$0xff] (!%p1261_p1), %v1840_v0  ;;  %335 = vst [vmem:[#allocation2 + $0x18] sm:$0xff] (!%p1261_p1), %v1840_v0 }
  0x9d PF: > { %v1462_v1 = vld [vmem:[%s2101_s28 + $0x4] ss:$8 sps:$4 sm:$0xff]   ;;  %v1464_v2 = vld [vmem:[%s2101_s28] ss:$8 sps:$4 sm:$0xff]   ;;  %v1465_v3 = vld [vmem:[%s2101_s28 + $0x14] ss:$8 sps:$4 sm:$0xff]  }
  0x9e   : > { %540 = vmatprep.subr.bf16.mxu0 %v1462_v1  ;;  %v1467_v4 = vld [vmem:[%s2101_s28 + $0x10] ss:$8 sps:$4 sm:$0xff]   ;;  %v1468_v5 = vld [vmem:[%s2101_s28 + $0x24] ss:$8 sps:$4 sm:$0xff]   ;;  %v1470_v6 = vld [vmem:[%s2101_s28 + $0x20] ss:$8 sps:$4 sm:$0xff]  }
  0x9f   : > { %541 = vmatpush1.bf16.msra.mxu0 %v1464_v2  ;;  %v1471_v7 = vld [vmem:[%s2101_s28 + $0x34] ss:$8 sps:$4 sm:$0xff]   ;;  %v1483_v8 = vld [vmem:[%s2107_s24 + $0x4] ss:$8 sps:$4 sm:$0xff]   ;;  %v1485_v9 = vld [vmem:[%s2107_s24] ss:$8 sps:$4 sm:$0xff]  }
  0xa0   : > { %542 = vmatprep.subr.bf16.mxu0 %v1465_v3  ;;  %v1473_v10 = vld [vmem:[%s2101_s28 + $0x30] ss:$8 sps:$4 sm:$0xff]   ;;  %v1474_v11 = vld [vmem:[%s2101_s28 + $0x44] ss:$8 sps:$4 sm:$0xff]   ;;  %775 = vmatprep.subr.bf16.mxu1 %v1483_v8  ;;  %v1489_v12 = vld [vmem:[%s2107_s24 + $0x14] ss:$8 sps:$4 sm:$0xff]  }
  0xa1   : > { %776 = vmatpush1.bf16.msra.mxu1 %v1485_v9  ;;  %v1491_v13 = vld [vmem:[%s2107_s24 + $0x10] ss:$8 sps:$4 sm:$0xff]   ;;  %v1476_v14 = vld [vmem:[%s2101_s28 + $0x40] ss:$8 sps:$4 sm:$0xff]   ;;  %v1495_v15 = vld [vmem:[%s2107_s24 + $0x24] ss:$8 sps:$4 sm:$0xff]  }
  0xa2   : > { %777 = vmatprep.subr.bf16.mxu1 %v1489_v12  ;;  %v1477_v16 = vld [vmem:[%s2101_s28 + $0x54] ss:$8 sps:$4 sm:$0xff]   ;;  %v1497_v17 = vld [vmem:[%s2107_s24 + $0x20] ss:$8 sps:$4 sm:$0xff]   ;;  %v1479_v19 = vld [vmem:[%s2101_s28 + $0x50] ss:$8 sps:$4 sm:$0xff]  }
  0xa3   : > { %543 = vmatpush1.bf16.msra.mxu0 %v1467_v4  ;;  %v1501_v18 = vld [vmem:[%s2107_s24 + $0x34] ss:$8 sps:$4 sm:$0xff]   ;;  %v1480_v20 = vld [vmem:[%s2101_s28 + $0x64] ss:$8 sps:$4 sm:$0xff]   ;;  %v1503_v21 = vld [vmem:[%s2107_s24 + $0x30] ss:$8 sps:$4 sm:$0xff]  }
  0xa4   : > { %544 = vmatprep.subr.bf16.mxu0 %v1468_v5  ;;  %v1507_v22 = vld [vmem:[%s2107_s24 + $0x44] ss:$8 sps:$4 sm:$0xff]   ;;  %v1482_v23 = vld [vmem:[%s2101_s28 + $0x60] ss:$8 sps:$4 sm:$0xff]   ;;  %v1486_v24 = vld [vmem:[%s2101_s28 + $0x74] ss:$8 sps:$4 sm:$0xff]  }
  0xa5   : > { %778 = vmatpush1.bf16.msra.mxu1 %v1491_v13  ;;  %v1509_v25 = vld [vmem:[%s2107_s24 + $0x40] ss:$8 sps:$4 sm:$0xff]   ;;  %v1513_v26 = vld [vmem:[%s2107_s24 + $0x54] ss:$8 sps:$4 sm:$0xff]   ;;  %v1488_v27 = vld [vmem:[%s2101_s28 + $0x70] ss:$8 sps:$4 sm:$0xff]  }
  0xa6   : > { %779 = vmatprep.subr.bf16.mxu1 %v1495_v15  ;;  %v1492_v28 = vld [vmem:[%s2101_s28 + $0x84] ss:$8 sps:$4 sm:$0xff]   ;;  %v1515_v29 = vld [vmem:[%s2107_s24 + $0x50] ss:$8 sps:$4 sm:$0xff]   ;;  %v1494_v31 = vld [vmem:[%s2101_s28 + $0x80] ss:$8 sps:$4 sm:$0xff]  }
  0xa7   : > { %545 = vmatpush1.bf16.msra.mxu0 %v1470_v6  ;;  %v1519_v30 = vld [vmem:[%s2107_s24 + $0x64] ss:$8 sps:$4 sm:$0xff]   ;;  %v1498_v32 = vld [vmem:[%s2101_s28 + $0x94] ss:$8 sps:$4 sm:$0xff]   ;;  %v1521_v33 = vld [vmem:[%s2107_s24 + $0x60] ss:$8 sps:$4 sm:$0xff]  }
  0xa8   : > { %546 = vmatprep.subr.bf16.mxu0 %v1471_v7  ;;  %v1525_v34 = vld [vmem:[%s2107_s24 + $0x74] ss:$8 sps:$4 sm:$0xff]   ;;  %v1500_v35 = vld [vmem:[%s2101_s28 + $0x90] ss:$8 sps:$4 sm:$0xff]   ;;  %v1504_v37 = vld [vmem:[%s2101_s28 + $0xa4] ss:$8 sps:$4 sm:$0xff]  }
  0xa9   : > { %780 = vmatpush1.bf16.msra.mxu1 %v1497_v17  ;;  %v1542_v36 = vld [vmem:[#allocation3 + $0x4] ss:$8 sps:$4 sm:$0xff]   ;;  %v1527_v38 = vld [vmem:[%s2107_s24 + $0x70] ss:$8 sps:$4 sm:$0xff]   ;;  %v1531_v39 = vld [vmem:[%s2107_s24 + $0x84] ss:$8 sps:$4 sm:$0xff]  }
  0xaa   : > { %781 = vmatprep.subr.bf16.mxu1 %v1501_v18  ;;  %572 = vmatprep.mubr.bf16.mxu0 %v1542_v36  ;;  %v1506_v40 = vld [vmem:[%s2101_s28 + $0xa0] ss:$8 sps:$4 sm:$0xff]   ;;  %v1510_v41 = vld [vmem:[%s2101_s28 + $0xb4] ss:$8 sps:$4 sm:$0xff]   ;;  %v1512_v44 = vld [vmem:[%s2101_s28 + $0xb0] ss:$8 sps:$4 sm:$0xff]  }
  0xab   : > { %547 = vmatpush1.bf16.msra.mxu0 %v1473_v10  ;;  %807 = vmatprep.mubr.bf16.mxu1 %v1542_v36  ;;  %v1533_v42 = vld [vmem:[%s2107_s24 + $0x80] ss:$8 sps:$4 sm:$0xff]   ;;  %v1537_v43 = vld [vmem:[%s2107_s24 + $0x94] ss:$8 sps:$4 sm:$0xff]   ;;  %v1516_v45 = vld [vmem:[%s2101_s28 + $0xc4] ss:$8 sps:$4 sm:$0xff]  }
  0xac   : > { %548 = vmatprep.subr.bf16.mxu0 %v1474_v11  ;;  %v1539_v46 = vld [vmem:[%s2107_s24 + $0x90] ss:$8 sps:$4 sm:$0xff]   ;;  %v1543_v47 = vld [vmem:[%s2107_s24 + $0xa4] ss:$8 sps:$4 sm:$0xff]   ;;  %v1518_v48 = vld [vmem:[%s2101_s28 + $0xc0] ss:$8 sps:$4 sm:$0xff]  }
  0xad   : > { %782 = vmatpush1.bf16.msra.mxu1 %v1503_v21  ;;  %v1522_v49 = vld [vmem:[%s2101_s28 + $0xd4] ss:$8 sps:$4 sm:$0xff]   ;;  %v1545_v50 = vld [vmem:[%s2107_s24 + $0xa0] ss:$8 sps:$4 sm:$0xff]   ;;  %v1524_v52 = vld [vmem:[%s2101_s28 + $0xd0] ss:$8 sps:$4 sm:$0xff]  }
  0xae   : > { %783 = vmatprep.subr.bf16.mxu1 %v1507_v22  ;;  %v1546_v51 = vld [vmem:[%s2107_s24 + $0xb4] ss:$8 sps:$4 sm:$0xff]   ;;  %v1528_v53 = vld [vmem:[%s2101_s28 + $0xe4] ss:$8 sps:$4 sm:$0xff]   ;;  %v1548_v54 = vld [vmem:[%s2107_s24 + $0xb0] ss:$8 sps:$4 sm:$0xff]  }
  0xaf   : > { %549 = vmatpush1.bf16.msra.mxu0 %v1476_v14  ;;  %v1530_v55 = vld [vmem:[%s2101_s28 + $0xe0] ss:$8 sps:$4 sm:$0xff]   ;;  %v1549_v56 = vld [vmem:[%s2107_s24 + $0xc4] ss:$8 sps:$4 sm:$0xff]   ;;  %v1534_v57 = vld [vmem:[%s2101_s28 + $0xf4] ss:$8 sps:$4 sm:$0xff]  }
  0xb0   : > { %550 = vmatprep.subr.bf16.mxu0 %v1477_v16  ;;  %v1551_v58 = vld [vmem:[%s2107_s24 + $0xc0] ss:$8 sps:$4 sm:$0xff]   ;;  %v1552_v59 = vld [vmem:[%s2107_s24 + $0xd4] ss:$8 sps:$4 sm:$0xff]   ;;  %v1536_v60 = vld [vmem:[%s2101_s28 + $0xf0] ss:$8 sps:$4 sm:$0xff]  }
  0xb1   : > { %784 = vmatpush1.bf16.msra.mxu1 %v1509_v25  ;;  %v1563_v61 = vld [vmem:[%s2109_s26 + $0x4] ss:$8 sps:$4 sm:$0xff]   ;;  %v1554_v62 = vld [vmem:[%s2107_s24 + $0xd0] ss:$8 sps:$4 sm:$0xff]   ;;  %v1561_v1 = vld [vmem:[%s2109_s26] ss:$8 sps:$4 sm:$0xff]  }
  0xb2   : > { %785 = vmatprep.subr.bf16.mxu1 %v1513_v26  ;;  %v1540_v63 = vld [vmem:[#allocation3] ss:$8 sps:$4 sm:$0xff]   ;;  %v1555_v0 = vld [vmem:[%s2107_s24 + $0xe4] ss:$8 sps:$4 sm:$0xff]   ;;  %v1566_v2 = vld [vmem:[%s2109_s26 + $0x14] ss:$8 sps:$4 sm:$0xff]  }
  0xb3   : > { %551 = vmatpush1.bf16.msra.mxu0 %v1479_v19  ;;  %v1557_v3 = vld [vmem:[%s2107_s24 + $0xe0] ss:$8 sps:$4 sm:$0xff]   ;;  %v1558_v4 = vld [vmem:[%s2107_s24 + $0xf4] ss:$8 sps:$4 sm:$0xff]   ;;  %v1564_v5 = vld [vmem:[%s2109_s26 + $0x10] ss:$8 sps:$4 sm:$0xff]  }
  0xb4   : > { %552 = vmatprep.subr.bf16.mxu0 %v1480_v20  ;;  %v1569_v6 = vld [vmem:[%s2109_s26 + $0x24] ss:$8 sps:$4 sm:$0xff]   ;;  %v1560_v7 = vld [vmem:[%s2107_s24 + $0xf0] ss:$8 sps:$4 sm:$0xff]   ;;  %v1567_v8 = vld [vmem:[%s2109_s26 + $0x20] ss:$8 sps:$4 sm:$0xff]  }
  0xb5   : > { %786 = vmatpush1.bf16.msra.mxu1 %v1515_v29  ;;  %v1572_v9 = vld [vmem:[%s2109_s26 + $0x34] ss:$8 sps:$4 sm:$0xff]   ;;  %v1570_v10 = vld [vmem:[%s2109_s26 + $0x30] ss:$8 sps:$4 sm:$0xff]   ;;  %v1575_v11 = vld [vmem:[%s2109_s26 + $0x44] ss:$8 sps:$4 sm:$0xff]  }
  0xb6   : > { %787 = vmatprep.subr.bf16.mxu1 %v1519_v30  ;;  %v1573_v12 = vld [vmem:[%s2109_s26 + $0x40] ss:$8 sps:$4 sm:$0xff]   ;;  %v1578_v13 = vld [vmem:[%s2109_s26 + $0x54] ss:$8 sps:$4 sm:$0xff]   ;;  %v1576_v14 = vld [vmem:[%s2109_s26 + $0x50] ss:$8 sps:$4 sm:$0xff]  }
  0xb7   : > { %553 = vmatpush1.bf16.msra.mxu0 %v1482_v23  ;;  %v1581_v15 = vld [vmem:[%s2109_s26 + $0x64] ss:$8 sps:$4 sm:$0xff]   ;;  %v1579_v16 = vld [vmem:[%s2109_s26 + $0x60] ss:$8 sps:$4 sm:$0xff]   ;;  %v1584_v17 = vld [vmem:[%s2109_s26 + $0x74] ss:$8 sps:$4 sm:$0xff]  }
  0xb8   : > { %554 = vmatprep.subr.bf16.mxu0 %v1486_v24  ;;  %v1582_v18 = vld [vmem:[%s2109_s26 + $0x70] ss:$8 sps:$4 sm:$0xff]   ;;  %v1587_v19 = vld [vmem:[%s2109_s26 + $0x84] ss:$8 sps:$4 sm:$0xff]   ;;  %v1585_v20 = vld [vmem:[%s2109_s26 + $0x80] ss:$8 sps:$4 sm:$0xff]  }
  0xb9   : > { %788 = vmatpush1.bf16.msra.mxu1 %v1521_v33  ;;  %v1590_v21 = vld [vmem:[%s2109_s26 + $0x94] ss:$8 sps:$4 sm:$0xff]   ;;  %v1588_v22 = vld [vmem:[%s2109_s26 + $0x90] ss:$8 sps:$4 sm:$0xff]   ;;  %v1593_v23 = vld [vmem:[%s2109_s26 + $0xa4] ss:$8 sps:$4 sm:$0xff]  }
  0xba   : > { %789 = vmatprep.subr.bf16.mxu1 %v1525_v34  ;;  %v1591_v24 = vld [vmem:[%s2109_s26 + $0xa0] ss:$8 sps:$4 sm:$0xff]   ;;  %v1596_v25 = vld [vmem:[%s2109_s26 + $0xb4] ss:$8 sps:$4 sm:$0xff]   ;;  %v1594_v26 = vld [vmem:[%s2109_s26 + $0xb0] ss:$8 sps:$4 sm:$0xff]  }
  0xbb   : > { %555 = vmatpush1.bf16.msra.mxu0 %v1488_v27  ;;  %v1599_v27 = vld [vmem:[%s2109_s26 + $0xc4] ss:$8 sps:$4 sm:$0xff]   ;;  %v1602_v29 = vld [vmem:[%s2109_s26 + $0xd4] ss:$8 sps:$4 sm:$0xff]   ;;  %v1600_v30 = vld [vmem:[%s2109_s26 + $0xd0] ss:$8 sps:$4 sm:$0xff]  }
  0xbc   : > { %556 = vmatprep.subr.bf16.mxu0 %v1492_v28  ;;  %v1597_v28 = vld [vmem:[%s2109_s26 + $0xc0] ss:$8 sps:$4 sm:$0xff]   ;;  %v1608_v33 = vld [vmem:[%s2109_s26 + $0xf4] ss:$8 sps:$4 sm:$0xff]   ;;  %v1606_v34 = vld [vmem:[%s2109_s26 + $0xf0] ss:$8 sps:$4 sm:$0xff]  }
  0xbd   : > { %790 = vmatpush1.bf16.msra.mxu1 %v1527_v38  ;;  %p1364_p4 = scmp.ne.s32.totalorder %s1823_s18, 1 }
  0xbe   : > { %791 = vmatprep.subr.bf16.mxu1 %v1531_v39 }
  0xbf   : > { %557 = vmatpush1.bf16.msra.mxu0 %v1494_v31  ;;  %v1605_v31 = vld [vmem:[%s2109_s26 + $0xe4] ss:$8 sps:$4 sm:$0xff]  }
  0xc0   : > { %558 = vmatprep.subr.bf16.mxu0 %v1498_v32  ;;  %v1603_v32 = vld [vmem:[%s2109_s26 + $0xe0] ss:$8 sps:$4 sm:$0xff]  }
  0xc1   : > { %792 = vmatpush1.bf16.msra.mxu1 %v1533_v42 }
  0xc2   : > { %793 = vmatprep.subr.bf16.mxu1 %v1537_v43 }
  0xc3   : > { %559 = vmatpush1.bf16.msra.mxu0 %v1500_v35 }
  0xc4   : > { %560 = vmatprep.subr.bf16.mxu0 %v1504_v37 }
  0xc5   : > { %794 = vmatpush1.bf16.msra.mxu1 %v1539_v46 }
  0xc6   : > { %795 = vmatprep.subr.bf16.mxu1 %v1543_v47 }
  0xc7   : > { %561 = vmatpush1.bf16.msra.mxu0 %v1506_v40 }
  0xc8   : > { %562 = vmatprep.subr.bf16.mxu0 %v1510_v41 }
  0xc9   : > { %796 = vmatpush1.bf16.msra.mxu1 %v1545_v50 }
  0xca   : > { %797 = vmatprep.subr.bf16.mxu1 %v1546_v51 }
  0xcb   : > { %563 = vmatpush1.bf16.msra.mxu0 %v1512_v44 }
  0xcc   : > { %564 = vmatprep.subr.bf16.mxu0 %v1516_v45 }
  0xcd   : > { %798 = vmatpush1.bf16.msra.mxu1 %v1548_v54 }
  0xce   : > { %799 = vmatprep.subr.bf16.mxu1 %v1549_v56 }
  0xcf   : > { %565 = vmatpush1.bf16.msra.mxu0 %v1518_v48 }
  0xd0   : > { %566 = vmatprep.subr.bf16.mxu0 %v1522_v49 }
  0xd1   : > { %800 = vmatpush1.bf16.msra.mxu1 %v1551_v58 }
  0xd2   : > { %801 = vmatprep.subr.bf16.mxu1 %v1552_v59 }
  0xd3   : > { %567 = vmatpush1.bf16.msra.mxu0 %v1524_v52 }
  0xd4   : > { %568 = vmatprep.subr.bf16.mxu0 %v1528_v53 }
  0xd5   : > { %802 = vmatpush1.bf16.msra.mxu1 %v1554_v62 }
  0xd6   : > { %803 = vmatprep.subr.bf16.mxu1 %v1555_v0 }
  0xd7   : > { %569 = vmatpush1.bf16.msra.mxu0 %v1530_v55 }
  0xd8   : > { %570 = vmatprep.subr.bf16.mxu0 %v1534_v57 }
  0xd9   : > { %804 = vmatpush1.bf16.msra.mxu1 %v1557_v3 }
  0xda   : > { %805 = vmatprep.subr.bf16.mxu1 %v1558_v4 }
  0xdb   : > { %571 = vmatpush1.bf16.msra.mxu0 %v1536_v60 }
  0xdc   : > { %1048 = vmatprep.subr.bf16.mxu0 %v1563_v61 }
  0xdd   : > { %806 = vmatpush1.bf16.msra.mxu1 %v1560_v7 }
  0xde   : > { %573 = vmatmul.mubr.bf16.vlgmr.msra.gmra.mrb[0].mxu0 %v1540_v63 }
  0xdf   : > { %1049 = vmatpush1.bf16.msra.mxu0 %v1561_v1 }
  0xe0   : > { %1050 = vmatprep.subr.bf16.mxu0 %v1566_v2  ;;  %808 = vmatmul.mubr.bf16.vlgmr.msra.gmra.mrb[0].mxu1 %v1540_v63 }
  0xe3   : > { %1051 = vmatpush1.bf16.msra.mxu0 %v1564_v5  ;;  %v850_v5 = vld [vmem:[#allocation2] sm:$0xff] }
  0xe4   : > { %1052 = vmatprep.subr.bf16.mxu0 %v1569_v6  ;;  %v851_v6 = vld [vmem:[#allocation2 + $0x8] sm:$0xff] }
  0xe7   : > { %1053 = vmatpush1.bf16.msra.mxu0 %v1567_v8  ;;  %v852_v8 = vld [vmem:[#allocation2 + $0x10] sm:$0xff] }
  0xe8   : > { %1054 = vmatprep.subr.bf16.mxu0 %v1572_v9 }
  0xeb   : > { %1055 = vmatpush1.bf16.msra.mxu0 %v1570_v10 }
  0xec   : > { %1056 = vmatprep.subr.bf16.mxu0 %v1575_v11  ;;  %v853_v11 = vld [vmem:[#allocation2 + $0x18] sm:$0xff] }
  0xef   : > { %1057 = vmatpush1.bf16.msra.mxu0 %v1573_v12 }
  0xf0   : > { %1058 = vmatprep.subr.bf16.mxu0 %v1578_v13 }
  0xf3   : > { %1059 = vmatpush1.bf16.msra.mxu0 %v1576_v14 }
  0xf4   : > { %1060 = vmatprep.subr.bf16.mxu0 %v1581_v15 }
  0xf7   : > { %1061 = vmatpush1.bf16.msra.mxu0 %v1579_v16 }
  0xf8   : > { %1062 = vmatprep.subr.bf16.mxu0 %v1584_v17 }
  0xfb   : > { %1063 = vmatpush1.bf16.msra.mxu0 %v1582_v18 }
  0xfc   : > { %1064 = vmatprep.subr.bf16.mxu0 %v1587_v19 }
  0xff   : > { %1065 = vmatpush1.bf16.msra.mxu0 %v1585_v20 }
 0x100   : > { %1066 = vmatprep.subr.bf16.mxu0 %v1590_v21 }
 0x103   : > { %1067 = vmatpush1.bf16.msra.mxu0 %v1588_v22 }
 0x104   : > { %1068 = vmatprep.subr.bf16.mxu0 %v1593_v23 }
 0x107   : > { %1069 = vmatpush1.bf16.msra.mxu0 %v1591_v24 }
 0x108   : > { %1070 = vmatprep.subr.bf16.mxu0 %v1596_v25 }
 0x10b   : > { %1071 = vmatpush1.bf16.msra.mxu0 %v1594_v26 }
 0x10c   : > { %1072 = vmatprep.subr.bf16.mxu0 %v1599_v27 }
 0x10f   : > { %1073 = vmatpush1.bf16.msra.mxu0 %v1597_v28 }
 0x110   : > { %1074 = vmatprep.subr.bf16.mxu0 %v1602_v29 }
 0x113   : > { %1075 = vmatpush1.bf16.msra.mxu0 %v1600_v30 }
 0x114   : > { %1076 = vmatprep.subr.bf16.mxu0 %v1605_v31 }
 0x117   : > { %1077 = vmatpush1.bf16.msra.mxu0 %v1603_v32 }
 0x118   : > { %1078 = vmatprep.subr.bf16.mxu0 %v1608_v33 }
 0x11b   : > { %1079 = vmatpush1.bf16.msra.mxu0 %v1606_v34 }
 0x1b1   : > { %v574_v35 = vpop.f32.mrb[0].mxu0 }
 0x1b2   : > { %v1328_v36 = vmul.f32 -1.442695, %v574_v35  ;;  %v576_v37 = vpop.f32.mrb[1].mxu0 }
 0x1b3   : > { %v1329_v38 = vmul.f32 -1.442695, %v576_v37  ;;  %v578_v39 = vpop.f32.mrb[2].mxu0  ;;  %v809_v43 = vpop.f32.mrb[0].mxu1 }
 0x1b4   : > { %1609 = vpow2.f32 %v1328_v36  ;;  %v1330_v40 = vmul.f32 -1.442695, %v578_v39  ;;  %v580_v41 = vpop.f32.mrb[3].mxu0  ;;  %v811_v44 = vpop.f32.mrb[1].mxu1 }
 0x1b5   : > { %1611 = vpow2.f32 %v1329_v38  ;;  %v1331_v42 = vmul.f32 -1.442695, %v580_v41  ;;  %v813_v45 = vpop.f32.mrb[2].mxu1 }
 0x1b6   : > { %1613 = vpow2.f32 %v1330_v40  ;;  %v815_v47 = vpop.f32.mrb[3].mxu1 }
 0x1b7   : > { %1615 = vpow2.f32 %v1331_v42 }
 0x1be   : > { %v1610_v46 = vpop.eup %1609 }
 0x1bf   : > { %v1612_v48 = vpop.eup %1611  ;;  %v830_v49 = vadd.f32 1.0, %v1610_v46 }
 0x1c0   : > { %v1614_v50 = vpop.eup %1613  ;;  %v831_v51 = vadd.f32 1.0, %v1612_v48 }
 0x1c1   : > { %v1616_v52 = vpop.eup %1615  ;;  %1617 = vrcp.f32 %v830_v49  ;;  %v832_v53 = vadd.f32 1.0, %v1614_v50 }
 0x1c2   : > { %1619 = vrcp.f32 %v831_v51  ;;  %v833_v54 = vadd.f32 1.0, %v1616_v52 }
 0x1c3   : > { %1621 = vrcp.f32 %v832_v53 }
 0x1c4   : > { %1623 = vrcp.f32 %v833_v54 }
 0x1cb   : > { %v1618_v55 = vpop.eup %1617 }
 0x1cc   : > { %v1620_v56 = vpop.eup %1619  ;;  %v842_v57 = vmul.f32 %v1618_v55, %v574_v35 }
 0x1cd   : > { %v1622_v58 = vpop.eup %1621  ;;  %v843_v59 = vmul.f32 %v1620_v56, %v576_v37 }
 0x1ce   : > { %v1624_v60 = vpop.eup %1623  ;;  %v844_v61 = vmul.f32 %v1622_v58, %v578_v39  ;;  %v846_v62 = vmul.f32 %v842_v57, %v809_v43 }
 0x1cf   : > { %v845_v63 = vmul.f32 %v1624_v60, %v580_v41  ;;  %v847_v0 = vmul.f32 %v843_v59, %v811_v44 }
 0x1d0   : > { %v848_v1 = vmul.f32 %v844_v61, %v813_v45 }
 0x1d1   : > { %v849_v2 = vmul.f32 %v845_v63, %v815_v47 }
 0x1d2   : > { %v854_v3 = vpack.c.bf16 %v848_v1, %v846_v62 }
 0x1d3   : > { %v855_v4 = vpack.c.bf16 %v849_v2, %v847_v0 }
 0x1d5   : > { %1080 = vmatprep.mubr.bf16.mxu0 %v855_v4 }
 0x1d6   : > { %1081 = vmatmul.mubr.bf16.vlgmr.msra.gmra.mrb[4].mxu0 %v854_v3 }
 0x2a9   : > { %v1082_v7 = vpop.f32.mrb[4].mxu0  ;;  %1102 = sbr.rel (%p1364_p4) target bundleno = 696 (0x2b8), region = 60 }
 0x2aa   : > { %v1091_v9 = vadd.f32 %v1082_v7, %v850_v5  ;;  %v1084_v10 = vpop.f32.mrb[5].mxu0 }
 0x2ab   : > { %v1092_v12 = vadd.f32 %v1084_v10, %v851_v6  ;;  %v1086_v13 = vpop.f32.mrb[6].mxu0 }
 0x2ac   : > { %1095 = vst [vmem:[#allocation2] sm:$0xff] %v1091_v9  ;;  %v1093_v14 = vadd.f32 %v1086_v13, %v852_v8  ;;  %v1088_v15 = vpop.f32.mrb[7].mxu0 }
 0x2ad   : > { %1096 = vst [vmem:[#allocation2 + $0x8] sm:$0xff] %v1092_v12  ;;  %v1094_v16 = vadd.f32 %v1088_v15, %v853_v11 }
 0x2ae   : > { %1097 = vst [vmem:[#allocation2 + $0x10] sm:$0xff] %v1093_v14 }
 0x2af   : > { %1098 = vst [vmem:[#allocation2 + $0x18] sm:$0xff] %v1094_v16 }
 0x2b3   : > { %v1103_v17 = vld [vmem:[#allocation2] sm:$0xff] }
 0x2b4   : > { %v1104_v18 = vld [vmem:[#allocation2 + $0x8] sm:$0xff]  ;;  %1107 = vst [vmem:[#allocation11] sm:$0xff] %v1103_v17 }
 0x2b5   : > { %v1105_v19 = vld [vmem:[#allocation2 + $0x10] sm:$0xff]  ;;  %1108 = vst [vmem:[#allocation11 + $0x8] sm:$0xff] %v1104_v18 }
 0x2b6   : > { %1109 = vst [vmem:[#allocation11 + $0x10] sm:$0xff] %v1105_v19  ;;  %v1106_v20 = vld [vmem:[#allocation2 + $0x18] sm:$0xff] }
 0x2b7   : > { %1110 = vst [vmem:[#allocation11 + $0x18] sm:$0xff] %v1106_v20 }
 0x2b8 PF: > { %p1404_p7 = scmp.eq.s32.totalorder %s1976_s30, 1  ;;  %s1841_s5 = smov [#allocation11]  }
 0x2b9   : > { %s1121_s23 = sshll.u32 %s1841_s5, 4  ;;  %s1122_s23 = int_to_ptr.vmem [resolvable:$true] %s1121_s23 }
 0x2ba   : > { %s1743_s8 = scalar_lea.vmem %s1122_s23, 512  ;;  %p1750_p6 = scmp.lt.s32.totalorder %s1122_s23, %s1122_s23 }
 0x2bb   : > { %p1744_p9 = scmp.ne.s32.totalorder %s1122_s23, %s1743_s8  ;;  %p1751_p13 = scmp.lt.s32.totalorder %s1743_s8, %s1743_s8 }
 0x2bd   : > { %p1745_p12 = pnand %p1744_p9, %p1404_p7  ;;  %p1752_p3 = por %p1751_p13, %p1750_p6 }
 0x2bf   : > { %p1746_p10 = pneg %p1745_p12 }
 0x2c1   : > { %p1753_p2 = pnand %p1752_p3, %p1746_p10 }
 0x2c3   : > { %1756 = shalt.err (!%p1753_p2)
}
 0x2c4   : > { %s1757_s29 = scalar_lea.hbm %s2258_s4, 512 }
 0x2c5   : > { %p1758_p8 = scmp.ne.s32.totalorder %s2258_s4, %s1757_s29  ;;  %p1763_p0 = scmp.lt.u32.totalorder %s1757_s29, %s2258_s4 }
 0x2c7   : > { %p1759_p5 = pnand %p1758_p8, %p1404_p7 }
 0x2c9   : > { %p1760_p11 = pneg %p1759_p5 }
 0x2cb   : > { %p1765_p1 = pnand %p1763_p0, %p1760_p11 }
 0x2cd   : > { %1768 = shalt.err (!%p1765_p1)
}
 0x2ce   : > { %s1842_s25 = smov 256   ;;  %s1843_s10 = smov 16  }
 0x2cf   : > { %1384 = dma.vmem_to_hbm [thread:$0]  (%p1404_p7), %s1122_s23, 512, %s2258_s4, [#allocation5], %s1842_s25, %s1842_s25, %s1843_s10  }
 0x2d0   : > { %1806 = dma.done.wait (%p1404_p7), [#allocation5], 512  }
 0x2d1   : > { %1808 = vsyncadd (%p1404_p7), [#allocation5], 4294966784 }
 0x2d2 PF: > { %s22_s20 = sadd.s32 1, %s1831_s20   ;;  %s2290_s15 = smov %s1815_s16 }
 0x2d3   : > { %p19_p4 = scmp.ge.s32.totalorder %s22_s20, 4   ;;  %s2291_s16 = smov %s1819_s17 }
 0x2d4   : > { %s2292_s17 = smov %s1916_s27  ;;  %s2293_s18 = smov %s1827_s19 }
 0x2d5   : > { %s2294_s19 = smov %s2296_s21  ;;  %21 = sbr.rel (!%p19_p4) target bundleno = 11 (0xb), region = 112 }
 0x2dc   :  { %1137 = vsyncpa [#allocation4], 1 }
 0x2dd   :  { %1139 = vsyncpa [#allocation4 + $0x1], 1 }
 0x2de   :  { %1140 = vsyncpa [#allocation7], 1 }
 0x2df   :  { %1142 = vsyncpa [#allocation7 + $0x1], 1 }
 0x2e0   :  { %1143 = vsyncpa [#allocation10], 1 }
 0x2e1   :  { %1145 = vsyncpa [#allocation10 + $0x1], 1 }
 0x2e2   :  { %1146 = vsyncpa [#allocation5], 1 }
 0x2e3   :  { %1148 = vsyncpa [#allocation5 + $0x1], 1 }

</bundles_post_ra>
